<compile_context>
chip_gen: v5e
topology: v5e:2x2
jax: 0.10.0
libtpu: 0.0.40
codegen_flags: <defaults>
</compile_context>

<pallas_src>
import jax
import jax.numpy as jnp
from jax.experimental import pallas as pl
from jax.experimental.pallas import tpu as pltpu

EPS = 1e-5  # nn.LayerNorm default


def _layer_norm(h, gamma, beta):
  """f32 LayerNorm over the last axis."""
  mu = jnp.mean(h, axis=-1, keepdims=True)
  var = jnp.mean((h - mu) ** 2, axis=-1, keepdims=True)
  return (h - mu) * jax.lax.rsqrt(var + EPS) * gamma + beta


def encoder_stack_kernel(
    x_ref,                                   # (TB, S, E) f32 activations
    wv_ref, wo_ref, bo_ref,                  # attention V / out proj
    g1_ref, be1_ref,                         # norm1
    w1_ref, bf1_ref, w2_ref, bf2_ref,        # feed-forward
    g2_ref, be2_ref,                         # norm2
    o_ref):                                  # (TB, S, E) f32 output / carry
  l = pl.program_id(1)

  # Activation carry: layer 0 reads the HBM input block; later layers read the
  # previous layer's result, which stays resident in the output VMEM buffer
  # (its block index is constant across the layer grid axis).
  x = jnp.where(l == 0, x_ref[...], o_ref[...])          # (TB, S, E) f32
  TB, S, E = x.shape

  # --- SelfAttention (exact reduction of the reference einsum) -------------
  # einsum('nhqk,nvhd->nqhd', softmax(E), V) sums k and v independently and the
  # softmax rows sum to 1, so each row's attention output is sum_s V[n,s,:].
  # Since sum_s (x @ Wv) == (sum_s x) @ Wv, q/k projections, the SxS energy
  # matmul, the softmax and the per-head concat are all dead and dropped.
  xsum = jnp.sum(x, axis=1)                               # (TB, E) f32
  v_sum = jnp.dot(xsum.astype(jnp.bfloat16), wv_ref[0],
                  preferred_element_type=jnp.float32)     # (TB, E) f32
  attn = jnp.dot(v_sum.astype(jnp.bfloat16), wo_ref[0],
                 preferred_element_type=jnp.float32) + bo_ref[0]   # (TB, E)

  # --- norm1(attention + queries); dropout = identity at inference ---------
  h1 = x + attn[:, None, :]                               # broadcast over S
  h1 = h1.reshape(TB * S, E)                              # row-flatten for MXU
  n1 = _layer_norm(h1, g1_ref[0], be1_ref[0])             # (TB*S, E) f32

  # --- feed forward: Linear -> ReLU -> Linear -------------------------------
  f = jnp.dot(n1.astype(jnp.bfloat16), w1_ref[0],
              preferred_element_type=jnp.float32) + bf1_ref[0]
  f = jnp.maximum(f, 0.0)
  f = jnp.dot(f.astype(jnp.bfloat16), w2_ref[0],
              preferred_element_type=jnp.float32) + bf2_ref[0]

  # --- norm2(forward + residual); dropout = identity -----------------------
  n2 = _layer_norm(f + n1, g2_ref[0], be2_ref[0])

  o_ref[...] = n2.reshape(TB, S, E).astype(o_ref.dtype)


def encoder_layers(x, stacked):
  """Run all TransformerBlocks in one pallas_call.  x: (N, S, E) f32."""
  N, S, E = x.shape
  L = stacked["wv"].shape[0]
  FE = stacked["w1"].shape[2]

  # Batch tile: aim for >= 256 flattened rows per grid step (MXU fill), capped
  # at N and forced to divide N.
  TB = max(1, min(N, max(1, 256 // max(S, 1))))
  while N % TB:
    TB -= 1
  NB = N // TB

  def wspec(shape):  # per-layer weight slab, indexed by the layer grid axis
    return pl.BlockSpec((1,) + shape, lambda b, l: (l, 0, 0))

  return pl.pallas_call(
      encoder_stack_kernel,
      out_shape=jax.ShapeDtypeStruct((N, S, E), jnp.float32),
      grid=(NB, L),
      in_specs=[
          pl.BlockSpec((TB, S, E), lambda b, l: (b, 0, 0)),   # activations
          wspec((E, E)),                    # wv  (bf16)
          wspec((E, E)),                    # wo  (bf16)
          wspec((1, E)),                    # bo
          wspec((1, E)), wspec((1, E)),     # norm1 gamma / beta
          wspec((E, FE)), wspec((1, FE)),   # ffn w1 (bf16) / b1
          wspec((FE, E)), wspec((1, E)),    # ffn w2 (bf16) / b2
          wspec((1, E)), wspec((1, E)),     # norm2 gamma / beta
      ],
      out_specs=pl.BlockSpec((TB, S, E), lambda b, l: (b, 0, 0)),
      compiler_params=pltpu.CompilerParams(
          dimension_semantics=("parallel", "arbitrary")),
  )(x, stacked["wv"], stacked["wo"], stacked["bo"],
    stacked["g1"], stacked["be1"],
    stacked["w1"], stacked["bf1"], stacked["w2"], stacked["bf2"],
    stacked["g2"], stacked["be2"])


def init_encoder_params(key, vocab, max_len, E, num_layers, heads, FE):
  assert E % heads == 0, "Embed size needs to be divisible by heads"
  keys = jax.random.split(key, 2 + num_layers)
  word_emb = jax.random.normal(keys[0], (vocab, E), jnp.float32) * 0.02
  pos_emb = jax.random.normal(keys[1], (max_len, E), jnp.float32) * 0.02

  def make_layer(k):
    ks = jax.random.split(k, 6)
    s_e = 1.0 / (E ** 0.5)
    s_f = 1.0 / (FE ** 0.5)
    return {
        # wq / wk exist in the module but are provably dead in its forward
        # (the einsum factorizes and softmax rows sum to 1), so they are not
        # fed to the kernel.
        "wq": jax.random.normal(ks[0], (E, E), jnp.float32) * s_e,
        "wk": jax.random.normal(ks[1], (E, E), jnp.float32) * s_e,
        "wv": jax.random.normal(ks[2], (E, E), jnp.float32) * s_e,
        "wo": jax.random.normal(ks[3], (E, E), jnp.float32) * s_e,
        "bo": jnp.zeros((1, E), jnp.float32),
        "g1": jnp.ones((1, E), jnp.float32),
        "be1": jnp.zeros((1, E), jnp.float32),
        "w1": jax.random.normal(ks[4], (E, FE), jnp.float32) * s_e,
        "bf1": jnp.zeros((1, FE), jnp.float32),
        "w2": jax.random.normal(ks[5], (FE, E), jnp.float32) * s_f,
        "bf2": jnp.zeros((1, E), jnp.float32),
        "g2": jnp.ones((1, E), jnp.float32),
        "be2": jnp.zeros((1, E), jnp.float32),
    }

  layers = [make_layer(keys[2 + i]) for i in range(num_layers)]

  # Stack per-layer weights along a leading layer axis so one pallas_call can
  # stream them via its layer grid axis.  Matmul weights in bf16 (MXU-native,
  # half the DMA bytes); biases / LayerNorm params stay f32.
  def stack(name, dtype):
    return jnp.stack([lp[name] for lp in layers]).astype(dtype)

  stacked = {
      "wv": stack("wv", jnp.bfloat16), "wo": stack("wo", jnp.bfloat16),
      "bo": stack("bo", jnp.float32),
      "g1": stack("g1", jnp.float32), "be1": stack("be1", jnp.float32),
      "w1": stack("w1", jnp.bfloat16), "bf1": stack("bf1", jnp.float32),
      "w2": stack("w2", jnp.bfloat16), "bf2": stack("bf2", jnp.float32),
      "g2": stack("g2", jnp.float32), "be2": stack("be2", jnp.float32),
  }
  return {"word_emb": word_emb, "pos_emb": pos_emb, "stacked": stacked}


def encoder_forward(x_ids, params):
  N, S = x_ids.shape
  # Embedding gathers are data-dependent lookups; kept as plain-JAX glue.
  out = params["word_emb"][x_ids] + params["pos_emb"][jnp.arange(S)][None, :, :]
  # Encoder-level dropout = identity at inference.
  return encoder_layers(out, params["stacked"])


if __name__ == "__main__":
  vocab, max_len = 50, 16
  embed_size, num_layers, heads, forward_expansion = 32, 2, 4, 4
  N, S = 2, 8

  key = jax.random.PRNGKey(0)
  pkey, xkey = jax.random.split(key)
  params = init_encoder_params(pkey, vocab, max_len, embed_size,
                               num_layers, heads,
                               forward_expansion * embed_size)
  x_ids = jax.random.randint(xkey, (N, S), 0, vocab, dtype=jnp.int32)

  out = encoder_forward(x_ids, params)
  jax.block_until_ready(out)
  assert out.shape == (N, S, embed_size)
  print("KERNEL_OK")
</pallas_src>

<mosaic_0001>
module attributes {stable_mosaic.version = 11 : i64} {
  func.func @encoder_stack_kernel(%arg0: i32, %arg1: i32, %arg2: memref<2x8x32xf32, #tpu.memory_space<vmem>>, %arg3: memref<1x32x32xbf16, #tpu.memory_space<vmem>>, %arg4: memref<1x32x32xbf16, #tpu.memory_space<vmem>>, %arg5: memref<1x1x32xf32, #tpu.memory_space<vmem>>, %arg6: memref<1x1x32xf32, #tpu.memory_space<vmem>>, %arg7: memref<1x1x32xf32, #tpu.memory_space<vmem>>, %arg8: memref<1x32x128xbf16, #tpu.memory_space<vmem>>, %arg9: memref<1x1x128xf32, #tpu.memory_space<vmem>>, %arg10: memref<1x128x32xbf16, #tpu.memory_space<vmem>>, %arg11: memref<1x1x32xf32, #tpu.memory_space<vmem>>, %arg12: memref<1x1x32xf32, #tpu.memory_space<vmem>>, %arg13: memref<1x1x32xf32, #tpu.memory_space<vmem>>, %arg14: memref<2x8x32xf32, #tpu.memory_space<vmem>>) attributes {dimension_semantics = [#tpu.dimension_semantics<parallel>, #tpu.dimension_semantics<arbitrary>], iteration_bounds = array<i64: 1, 2>, scalar_prefetch = 0 : i64, scratch_operands = 0 : i64, tpu.core_type = #tpu.core_type<tc>, window_params = [{transform_indices = @transform_0, window_bounds = array<i64: 2, 8, 32>}, {transform_indices = @transform_1, window_bounds = array<i64: 1, 32, 32>}, {transform_indices = @transform_2, window_bounds = array<i64: 1, 32, 32>}, {transform_indices = @transform_3, window_bounds = array<i64: 1, 1, 32>}, {transform_indices = @transform_4, window_bounds = array<i64: 1, 1, 32>}, {transform_indices = @transform_5, window_bounds = array<i64: 1, 1, 32>}, {transform_indices = @transform_6, window_bounds = array<i64: 1, 32, 128>}, {transform_indices = @transform_7, window_bounds = array<i64: 1, 1, 128>}, {transform_indices = @transform_8, window_bounds = array<i64: 1, 128, 32>}, {transform_indices = @transform_9, window_bounds = array<i64: 1, 1, 32>}, {transform_indices = @transform_10, window_bounds = array<i64: 1, 1, 32>}, {transform_indices = @transform_11, window_bounds = array<i64: 1, 1, 32>}, {transform_indices = @transform_12, window_bounds = array<i64: 2, 8, 32>}]} {
    %c0_i32 = arith.constant 0 : i32
    %0 = arith.cmpi eq, %arg1, %c0_i32 : i32
    %c0 = arith.constant 0 : index
    %c0_0 = arith.constant 0 : index
    %c0_1 = arith.constant 0 : index
    %1 = vector.load %arg2[%c0, %c0_0, %c0_1] : memref<2x8x32xf32, #tpu.memory_space<vmem>>, vector<2x8x32xf32>
    %c0_2 = arith.constant 0 : index
    %c0_3 = arith.constant 0 : index
    %c0_4 = arith.constant 0 : index
    %2 = vector.load %arg14[%c0_2, %c0_3, %c0_4] : memref<2x8x32xf32, #tpu.memory_space<vmem>>, vector<2x8x32xf32>
    %3 = arith.select %0, %1, %2 : vector<2x8x32xf32>
    %cst = arith.constant dense<0.000000e+00> : vector<2x32xf32>
    %4 = vector.multi_reduction <add>, %3, %cst [1] : vector<2x8x32xf32> to vector<2x32xf32>
    %5 = arith.truncf %4 : vector<2x32xf32> to vector<2x32xbf16>
    %c0_5 = arith.constant 0 : index
    %c0_6 = arith.constant 0 : index
    %c0_7 = arith.constant 0 : index
    %6 = vector.load %arg3[%c0_5, %c0_6, %c0_7] : memref<1x32x32xbf16, #tpu.memory_space<vmem>>, vector<1x32x32xbf16>
    %7 = vector.shape_cast %6 : vector<1x32x32xbf16> to vector<32x32xbf16>
    %cst_8 = arith.constant dense<0.000000e+00> : vector<2x32xf32>
    %8 = tpu.matmul %5, %7, %cst_8 {dimension_numbers = #tpu.dot_dimension_numbers<[1], [0], [0], [1], [0, 0, 1, 1], [], []>} : vector<2x32xbf16>, vector<32x32xbf16>, vector<2x32xf32> -> vector<2x32xf32>
    %9 = arith.truncf %8 : vector<2x32xf32> to vector<2x32xbf16>
    %c0_9 = arith.constant 0 : index
    %c0_10 = arith.constant 0 : index
    %c0_11 = arith.constant 0 : index
    %10 = vector.load %arg4[%c0_9, %c0_10, %c0_11] : memref<1x32x32xbf16, #tpu.memory_space<vmem>>, vector<1x32x32xbf16>
    %11 = vector.shape_cast %10 : vector<1x32x32xbf16> to vector<32x32xbf16>
    %cst_12 = arith.constant dense<0.000000e+00> : vector<2x32xf32>
    %12 = tpu.matmul %9, %11, %cst_12 {dimension_numbers = #tpu.dot_dimension_numbers<[1], [0], [0], [1], [0, 0, 1, 1], [], []>} : vector<2x32xbf16>, vector<32x32xbf16>, vector<2x32xf32> -> vector<2x32xf32>
    %c0_13 = arith.constant 0 : index
    %c0_14 = arith.constant 0 : index
    %c0_15 = arith.constant 0 : index
    %13 = vector.load %arg5[%c0_13, %c0_14, %c0_15] : memref<1x1x32xf32, #tpu.memory_space<vmem>>, vector<1x1x32xf32>
    %14 = vector.shape_cast %13 : vector<1x1x32xf32> to vector<1x32xf32>
    %15 = vector.broadcast %14 : vector<1x32xf32> to vector<2x32xf32>
    %16 = arith.addf %12, %15 : vector<2x32xf32>
    %17 = vector.shape_cast %16 : vector<2x32xf32> to vector<2x1x32xf32>
    %18 = vector.broadcast %17 : vector<2x1x32xf32> to vector<2x8x32xf32>
    %19 = arith.addf %3, %18 : vector<2x8x32xf32>
    %20 = vector.shape_cast %19 : vector<2x8x32xf32> to vector<16x32xf32>
    %c0_16 = arith.constant 0 : index
    %c0_17 = arith.constant 0 : index
    %c0_18 = arith.constant 0 : index
    %21 = vector.load %arg6[%c0_16, %c0_17, %c0_18] : memref<1x1x32xf32, #tpu.memory_space<vmem>>, vector<1x1x32xf32>
    %22 = vector.shape_cast %21 : vector<1x1x32xf32> to vector<1x32xf32>
    %c0_19 = arith.constant 0 : index
    %c0_20 = arith.constant 0 : index
    %c0_21 = arith.constant 0 : index
    %23 = vector.load %arg7[%c0_19, %c0_20, %c0_21] : memref<1x1x32xf32, #tpu.memory_space<vmem>>, vector<1x1x32xf32>
    %24 = vector.shape_cast %23 : vector<1x1x32xf32> to vector<1x32xf32>
    %cst_22 = arith.constant dense<0.000000e+00> : vector<16xf32>
    %25 = vector.multi_reduction <add>, %20, %cst_22 [1] : vector<16x32xf32> to vector<16xf32>
    %26 = vector.shape_cast %25 : vector<16xf32> to vector<16x1xf32>
    %cst_23 = arith.constant 3.200000e+01 : f32
    %27 = vector.broadcast %cst_23 : f32 to vector<16x1xf32>
    %28 = arith.divf %26, %27 : vector<16x1xf32>
    %29 = vector.broadcast %28 : vector<16x1xf32> to vector<16x32xf32>
    %30 = arith.subf %20, %29 : vector<16x32xf32>
    %31 = arith.mulf %30, %30 : vector<16x32xf32>
    %cst_24 = arith.constant dense<0.000000e+00> : vector<16xf32>
    %32 = vector.multi_reduction <add>, %31, %cst_24 [1] : vector<16x32xf32> to vector<16xf32>
    %33 = vector.shape_cast %32 : vector<16xf32> to vector<16x1xf32>
    %cst_25 = arith.constant 3.200000e+01 : f32
    %34 = vector.broadcast %cst_25 : f32 to vector<16x1xf32>
    %35 = arith.divf %33, %34 : vector<16x1xf32>
    %36 = vector.broadcast %28 : vector<16x1xf32> to vector<16x32xf32>
    %37 = arith.subf %20, %36 : vector<16x32xf32>
    %cst_26 = arith.constant 9.99999974E-6 : f32
    %38 = vector.broadcast %cst_26 : f32 to vector<16x1xf32>
    %39 = arith.addf %35, %38 : vector<16x1xf32>
    %40 = math.rsqrt %39 : vector<16x1xf32>
    %41 = vector.broadcast %40 : vector<16x1xf32> to vector<16x32xf32>
    %42 = arith.mulf %37, %41 : vector<16x32xf32>
    %43 = vector.broadcast %22 : vector<1x32xf32> to vector<16x32xf32>
    %44 = arith.mulf %42, %43 : vector<16x32xf32>
    %45 = vector.broadcast %24 : vector<1x32xf32> to vector<16x32xf32>
    %46 = arith.addf %44, %45 : vector<16x32xf32>
    %47 = arith.truncf %46 : vector<16x32xf32> to vector<16x32xbf16>
    %c0_27 = arith.constant 0 : index
    %c0_28 = arith.constant 0 : index
    %c0_29 = arith.constant 0 : index
    %48 = vector.load %arg8[%c0_27, %c0_28, %c0_29] : memref<1x32x128xbf16, #tpu.memory_space<vmem>>, vector<1x32x128xbf16>
    %49 = vector.shape_cast %48 : vector<1x32x128xbf16> to vector<32x128xbf16>
    %cst_30 = arith.constant dense<0.000000e+00> : vector<16x128xf32>
    %50 = tpu.matmul %47, %49, %cst_30 {dimension_numbers = #tpu.dot_dimension_numbers<[1], [0], [0], [1], [0, 0, 1, 1], [], []>} : vector<16x32xbf16>, vector<32x128xbf16>, vector<16x128xf32> -> vector<16x128xf32>
    %c0_31 = arith.constant 0 : index
    %c0_32 = arith.constant 0 : index
    %c0_33 = arith.constant 0 : index
    %51 = vector.load %arg9[%c0_31, %c0_32, %c0_33] : memref<1x1x128xf32, #tpu.memory_space<vmem>>, vector<1x1x128xf32>
    %52 = vector.shape_cast %51 : vector<1x1x128xf32> to vector<1x128xf32>
    %53 = vector.broadcast %52 : vector<1x128xf32> to vector<16x128xf32>
    %54 = arith.addf %50, %53 : vector<16x128xf32>
    %cst_34 = arith.constant 0.000000e+00 : f32
    %55 = vector.broadcast %cst_34 : f32 to vector<16x128xf32>
    %56 = arith.maximumf %54, %55 : vector<16x128xf32>
    %57 = arith.truncf %56 : vector<16x128xf32> to vector<16x128xbf16>
    %c0_35 = arith.constant 0 : index
    %c0_36 = arith.constant 0 : index
    %c0_37 = arith.constant 0 : index
    %58 = vector.load %arg10[%c0_35, %c0_36, %c0_37] : memref<1x128x32xbf16, #tpu.memory_space<vmem>>, vector<1x128x32xbf16>
    %59 = vector.shape_cast %58 : vector<1x128x32xbf16> to vector<128x32xbf16>
    %cst_38 = arith.constant dense<0.000000e+00> : vector<16x32xf32>
    %60 = tpu.matmul %57, %59, %cst_38 {dimension_numbers = #tpu.dot_dimension_numbers<[1], [0], [0], [1], [0, 0, 1, 1], [], []>} : vector<16x128xbf16>, vector<128x32xbf16>, vector<16x32xf32> -> vector<16x32xf32>
    %c0_39 = arith.constant 0 : index
    %c0_40 = arith.constant 0 : index
    %c0_41 = arith.constant 0 : index
    %61 = vector.load %arg11[%c0_39, %c0_40, %c0_41] : memref<1x1x32xf32, #tpu.memory_space<vmem>>, vector<1x1x32xf32>
    %62 = vector.shape_cast %61 : vector<1x1x32xf32> to vector<1x32xf32>
    %63 = vector.broadcast %62 : vector<1x32xf32> to vector<16x32xf32>
    %64 = arith.addf %60, %63 : vector<16x32xf32>
    %65 = arith.addf %64, %46 : vector<16x32xf32>
    %c0_42 = arith.constant 0 : index
    %c0_43 = arith.constant 0 : index
    %c0_44 = arith.constant 0 : index
    %66 = vector.load %arg12[%c0_42, %c0_43, %c0_44] : memref<1x1x32xf32, #tpu.memory_space<vmem>>, vector<1x1x32xf32>
    %67 = vector.shape_cast %66 : vector<1x1x32xf32> to vector<1x32xf32>
    %c0_45 = arith.constant 0 : index
    %c0_46 = arith.constant 0 : index
    %c0_47 = arith.constant 0 : index
    %68 = vector.load %arg13[%c0_45, %c0_46, %c0_47] : memref<1x1x32xf32, #tpu.memory_space<vmem>>, vector<1x1x32xf32>
    %69 = vector.shape_cast %68 : vector<1x1x32xf32> to vector<1x32xf32>
    %cst_48 = arith.constant dense<0.000000e+00> : vector<16xf32>
    %70 = vector.multi_reduction <add>, %65, %cst_48 [1] : vector<16x32xf32> to vector<16xf32>
    %71 = vector.shape_cast %70 : vector<16xf32> to vector<16x1xf32>
    %cst_49 = arith.constant 3.200000e+01 : f32
    %72 = vector.broadcast %cst_49 : f32 to vector<16x1xf32>
    %73 = arith.divf %71, %72 : vector<16x1xf32>
    %74 = vector.broadcast %73 : vector<16x1xf32> to vector<16x32xf32>
    %75 = arith.subf %65, %74 : vector<16x32xf32>
    %76 = arith.mulf %75, %75 : vector<16x32xf32>
    %cst_50 = arith.constant dense<0.000000e+00> : vector<16xf32>
    %77 = vector.multi_reduction <add>, %76, %cst_50 [1] : vector<16x32xf32> to vector<16xf32>
    %78 = vector.shape_cast %77 : vector<16xf32> to vector<16x1xf32>
    %cst_51 = arith.constant 3.200000e+01 : f32
    %79 = vector.broadcast %cst_51 : f32 to vector<16x1xf32>
    %80 = arith.divf %78, %79 : vector<16x1xf32>
    %81 = vector.broadcast %73 : vector<16x1xf32> to vector<16x32xf32>
    %82 = arith.subf %65, %81 : vector<16x32xf32>
    %cst_52 = arith.constant 9.99999974E-6 : f32
    %83 = vector.broadcast %cst_52 : f32 to vector<16x1xf32>
    %84 = arith.addf %80, %83 : vector<16x1xf32>
    %85 = math.rsqrt %84 : vector<16x1xf32>
    %86 = vector.broadcast %85 : vector<16x1xf32> to vector<16x32xf32>
    %87 = arith.mulf %82, %86 : vector<16x32xf32>
    %88 = vector.broadcast %67 : vector<1x32xf32> to vector<16x32xf32>
    %89 = arith.mulf %87, %88 : vector<16x32xf32>
    %90 = vector.broadcast %69 : vector<1x32xf32> to vector<16x32xf32>
    %91 = arith.addf %89, %90 : vector<16x32xf32>
    %92 = vector.shape_cast %91 : vector<16x32xf32> to vector<2x8x32xf32>
    %c0_53 = arith.constant 0 : index
    %c0_54 = arith.constant 0 : index
    %c0_55 = arith.constant 0 : index
    %93 = vector.load %arg14[%c0_53, %c0_54, %c0_55] : memref<2x8x32xf32, #tpu.memory_space<vmem>>, vector<2x8x32xf32>
    tpu.vector_store %arg14[%c0_53, %c0_54, %c0_55], %92 {strides = array<i32>} : memref<2x8x32xf32, #tpu.memory_space<vmem>>, vector<2x8x32xf32>,
    return
  }
  func.func @transform_0(%arg0: i32, %arg1: i32) -> (i32, i32, i32) {
    %c0_i32 = arith.constant 0 : i32
    %c0_i32_0 = arith.constant 0 : i32
    %c0_i32_1 = arith.constant 0 : i32
    return %arg0, %c0_i32, %c0_i32_0 : i32, i32, i32
  }
  func.func @transform_1(%arg0: i32, %arg1: i32) -> (i32, i32, i32) {
    %c0_i32 = arith.constant 0 : i32
    %c0_i32_0 = arith.constant 0 : i32
    %c0_i32_1 = arith.constant 0 : i32
    return %arg1, %c0_i32, %c0_i32_0 : i32, i32, i32
  }
  func.func @transform_2(%arg0: i32, %arg1: i32) -> (i32, i32, i32) {
    %c0_i32 = arith.constant 0 : i32
    %c0_i32_0 = arith.constant 0 : i32
    %c0_i32_1 = arith.constant 0 : i32
    return %arg1, %c0_i32, %c0_i32_0 : i32, i32, i32
  }
  func.func @transform_3(%arg0: i32, %arg1: i32) -> (i32, i32, i32) {
    %c0_i32 = arith.constant 0 : i32
    %c0_i32_0 = arith.constant 0 : i32
    %c0_i32_1 = arith.constant 0 : i32
    return %arg1, %c0_i32, %c0_i32_0 : i32, i32, i32
  }
  func.func @transform_4(%arg0: i32, %arg1: i32) -> (i32, i32, i32) {
    %c0_i32 = arith.constant 0 : i32
    %c0_i32_0 = arith.constant 0 : i32
    %c0_i32_1 = arith.constant 0 : i32
    return %arg1, %c0_i32, %c0_i32_0 : i32, i32, i32
  }
  func.func @transform_5(%arg0: i32, %arg1: i32) -> (i32, i32, i32) {
    %c0_i32 = arith.constant 0 : i32
    %c0_i32_0 = arith.constant 0 : i32
    %c0_i32_1 = arith.constant 0 : i32
    return %arg1, %c0_i32, %c0_i32_0 : i32, i32, i32
  }
  func.func @transform_6(%arg0: i32, %arg1: i32) -> (i32, i32, i32) {
    %c0_i32 = arith.constant 0 : i32
    %c0_i32_0 = arith.constant 0 : i32
    %c0_i32_1 = arith.constant 0 : i32
    return %arg1, %c0_i32, %c0_i32_0 : i32, i32, i32
  }
  func.func @transform_7(%arg0: i32, %arg1: i32) -> (i32, i32, i32) {
    %c0_i32 = arith.constant 0 : i32
    %c0_i32_0 = arith.constant 0 : i32
    %c0_i32_1 = arith.constant 0 : i32
    return %arg1, %c0_i32, %c0_i32_0 : i32, i32, i32
  }
  func.func @transform_8(%arg0: i32, %arg1: i32) -> (i32, i32, i32) {
    %c0_i32 = arith.constant 0 : i32
    %c0_i32_0 = arith.constant 0 : i32
    %c0_i32_1 = arith.constant 0 : i32
    return %arg1, %c0_i32, %c0_i32_0 : i32, i32, i32
  }
  func.func @transform_9(%arg0: i32, %arg1: i32) -> (i32, i32, i32) {
    %c0_i32 = arith.constant 0 : i32
    %c0_i32_0 = arith.constant 0 : i32
    %c0_i32_1 = arith.constant 0 : i32
    return %arg1, %c0_i32, %c0_i32_0 : i32, i32, i32
  }
  func.func @transform_10(%arg0: i32, %arg1: i32) -> (i32, i32, i32) {
    %c0_i32 = arith.constant 0 : i32
    %c0_i32_0 = arith.constant 0 : i32
    %c0_i32_1 = arith.constant 0 : i32
    return %arg1, %c0_i32, %c0_i32_0 : i32, i32, i32
  }
  func.func @transform_11(%arg0: i32, %arg1: i32) -> (i32, i32, i32) {
    %c0_i32 = arith.constant 0 : i32
    %c0_i32_0 = arith.constant 0 : i32
    %c0_i32_1 = arith.constant 0 : i32
    return %arg1, %c0_i32, %c0_i32_0 : i32, i32, i32
  }
  func.func @transform_12(%arg0: i32, %arg1: i32) -> (i32, i32, i32) {
    %c0_i32 = arith.constant 0 : i32
    %c0_i32_0 = arith.constant 0 : i32
    %c0_i32_1 = arith.constant 0 : i32
    return %arg0, %c0_i32, %c0_i32_0 : i32, i32, i32
  }
}

</mosaic_0001>

<bundles_post_ra>
// kernel: tpu_custom_call.1
= control target key start
LH: loop header
LB: loop body
LE: loop exit
PB: predicated region body
PF: predicated region fallthrough
CT: control target
= control target key end

     0   :  { %17 = vsyncpa [#allocation3], 0  ;;  %s1404_s21 = smov 0   ;;  %s1406_s22 = smov 0   ;;  %s1556_s0 = inlined_call_operand.vmem [shape: f32[2,8,32], index: 0, kind: input, shape index: {}]   ;;  %s1557_s1 = inlined_call_operand.vmem [shape: bf16[2,32,32], index: 1, kind: input, shape index: {}]   ;;  %s1558_s2 = inlined_call_operand.vmem [shape: bf16[2,32,32], index: 2, kind: input, shape index: {}]   ;;  %s1559_s3 = inlined_call_operand.vmem [shape: f32[2,1,32], index: 3, kind: input, shape index: {}]   ;;  %s1560_s4 = inlined_call_operand.vmem [shape: f32[2,1,32], index: 4, kind: input, shape index: {}]   ;;  %s1561_s5 = inlined_call_operand.vmem [shape: f32[2,1,32], index: 5, kind: input, shape index: {}]   ;;  %s1562_s6 = inlined_call_operand.vmem [shape: bf16[2,32,128], index: 6, kind: input, shape index: {}]   ;;  %s1563_s7 = inlined_call_operand.vmem [shape: f32[2,1,128], index: 7, kind: input, shape index: {}]   ;;  %s1564_s8 = inlined_call_operand.vmem [shape: bf16[2,128,32], index: 8, kind: input, shape index: {}]   ;;  %s1565_s9 = inlined_call_operand.vmem [shape: f32[2,1,32], index: 9, kind: input, shape index: {}]   ;;  %s1566_s10 = inlined_call_operand.vmem [shape: f32[2,1,32], index: 10, kind: input, shape index: {}]   ;;  %s1567_s11 = inlined_call_operand.vmem [shape: f32[2,1,32], index: 11, kind: input, shape index: {}]   ;;  %s1568_s12 = inlined_call_operand.hbm [shape: f32[2,8,32], index: 12, kind: output, shape index: {}]  }
   0x1   :  { %s1408_s23 = smov 0  }
   0x2 LB: > { %s1134_s24 = sadd.s32 4294967295, %s1333_s23   ;;  %s32_s25 = sadd.s32 1, %s1329_s22  ;;  %s1333_s23 = sphi %s1408_s23, %s23_s23   ;;  %s1329_s22 = sphi %s1406_s22, %s1570_s22   ;;  %s1325_s21 = sphi %s1404_s21, %s1569_s21  }
   0x3   : > { %p33_p0 = scmp.ge.s32.totalorder %s32_s25, 2  ;;  %p1138_p1 = scmp.ge.s32.totalorder %s1333_s23, 1 }
   0x4   : > { %p472_p2 = scmp.lt.s32.totalorder %s1333_s23, 3 }
   0x5   : > { %s1572_s25 = smov (%p33_p0, %s32_s25), 0 }
   0x6   : > { %p473_p3 = pnand %p1138_p1, %p472_p2 }
   0x7   : > { %p556_p4 = scmp.lt.s32.totalorder (!%p473_p3), %s1325_s21, 1  ;;  %p599_p5 = scmp.eq.s32.totalorder (!%p473_p3), %s1325_s21, 0 }
   0x8   : > { %476 = sbr.rel (%p473_p3) target bundleno = 1139 (0x473), region = 68  ;;  %p1232_p6 = scmp.eq.s32.totalorder (!%p473_p3), %s1134_s24, 1 }
   0xd   : > { %s1574_s21 = smov (!%p556_p4, %s1325_s21), 1  ;;  %v600_v0 = vld [vmem:[%s1556_s0] sm:$0xff]  ;;  %v601_v1 = vld [vmem:[%s1556_s0 + $0x8] sm:$0xff]  ;;  %vm609_vm0 = vcmask 261120   ;;  %vm634_vm2 = vcmask 1041409   ;;  %v1335_v45 = vmov 32.0  }
   0xe   : > { %s604_s28 = scalar_select %p599_p5, 1, 0  ;;  %v602_v2 = vld [vmem:[#allocation2] sm:$0xff]  ;;  %v603_v3 = vld [vmem:[#allocation2 + $0x8] sm:$0xff]  ;;  %1269 = vrcp.f32 %v1335_v45 }
   0xf   : > { %s1429_s29 = sshll.u32 %s1574_s21, 4  ;;  %s568_s27 = scalar_lea.vmem %s1559_s3, %s1574_s21 }
  0x10   : > { %s560_s16 = scalar_lea.vmem %s1557_s1, %s1429_s29  ;;  %v605_v4 = vstv %s604_s28  ;;  %s1442_s19 = scalar_lea.vmem %s1558_s2, %s1429_s29  ;;  %v1262_v34 = vld [vmem:[%s568_s27] ss:$0 sm:$0xff] }
  0x11   : > { %v1215_v5 = vld [vmem:[%s560_s16 + $0x8] sm:$0xff]  ;;  %vm606_vm1 = vcmp.eq.s32.totalorder %v605_v4, 1  ;;  %v1214_v9 = vld [vmem:[%s560_s16] sm:$0xff]  ;;  %s571_s13 = scalar_lea.vmem %s1560_s4, %s1574_s21  ;;  %s574_s16 = scalar_lea.vmem %s1561_s5, %s1574_s21 }
  0x12   : > { %v1217_v6 = vld [vmem:[%s1442_s19 + $0x8] sm:$0xff]  ;;  %v607_v7 = vsel %vm606_vm1, %v600_v0, %v602_v2  ;;  %v608_v8 = vsel %vm606_vm1, %v601_v1, %v603_v3  ;;  %658 = vmatpush.bf16.msra.mxu0 %v1215_v5  ;;  %v1216_v30 = vld [vmem:[%s1442_s19] sm:$0xff]  ;;  %s582_s19 = scalar_lea.vmem %s1563_s7, %s1574_s21  ;;  %s579_s27 = scalar_lea.vmem %s1562_s6, %s1429_s29 }
  0x13   : > { %v610_v10 = vsel %vm609_vm0, %v607_v7, 0.0  ;;  %v617_v11 = vsel %vm609_vm0, %v608_v8, 0.0  ;;  %695 = vmatpush.bf16.msra.mxu1 %v1217_v6  ;;  %v1219_v62 = vld [vmem:[%s579_s27 + $0x8] sm:$0xff]  ;;  %v1218_v0 = vld [vmem:[%s579_s27] sm:$0xff]  ;;  %s1213_s28 = sshll.u32 %s1574_s21, 6  ;;  %s590_s27 = scalar_lea.vmem %s1565_s9, %s1574_s21 }
  0x14   : > { %v611_v12 = vrot.slane %v610_v10, 4  ;;  %v618_v13 = vrot.slane %v617_v11, 4  ;;  %v1270_v46 = vpop.eup %1269  ;;  %803 = vmatpush.bf16.msra.mxu2 %v1219_v62  ;;  %s1483_s15 = scalar_lea.vmem %s1564_s8, %s1213_s28  ;;  %v1266_v45 = vld [vmem:[%s590_s27] ss:$0 sm:$0xff]  ;;  %s593_s14 = scalar_lea.vmem %s1566_s10, %s1574_s21 }
  0x15   : > { %v719_v47 = vmul.f32 32.0, %v1270_v46  ;;  %vm723_vm3 = vweird.f32 %v1270_v46  ;;  %v1227_v3 = vld [vmem:[%s1483_s15 + $0x38] sm:$0xff]  ;;  %v1226_v6 = vld [vmem:[%s1483_s15 + $0x30] sm:$0xff]  ;;  %s596_s17 = scalar_lea.vmem %s1567_s11, %s1574_s21  ;;  %s1336_s27 = smov [#allocation2]  }
  0x16   : > { %v612_v14 = vadd.f32 %v611_v12, %v610_v10  ;;  %v619_v15 = vadd.f32 %v618_v13, %v617_v11  ;;  %659 = vmatpush.bf16.msra.mxu0 %v1214_v9  ;;  %882 = vmatpush.bf16.msra.mxu3 %v1227_v3  ;;  %v1225_v10 = vld [vmem:[%s1483_s15 + $0x28] sm:$0xff]  ;;  %v1224_v13 = vld [vmem:[%s1483_s15 + $0x20] sm:$0xff]  ;;  %s966_s21 = sshll.u32 %s1568_s12, 4  ;;  %s967_s21 = int_to_ptr.hbm [resolvable:$true] %s966_s21 }
  0x17   : > { %696 = vmatpush.bf16.msra.mxu1 %v1216_v30  ;;  %v720_v48 = vsub.f32 1.0, %v719_v47 }
  0x18   : > { %v613_v16 = vrot.slane %v612_v14, 2  ;;  %v620_v17 = vrot.slane %v619_v15, 2  ;;  %804 = vmatpush.bf16.msra.mxu2 %v1218_v0 }
  0x19   : > { %v721_v49 = vmul.f32 %v1270_v46, %v720_v48 }
  0x1a   : > { %v614_v18 = vadd.f32 %v613_v16, %v612_v14  ;;  %v621_v19 = vadd.f32 %v620_v17, %v619_v15  ;;  %883 = vmatpush.bf16.msra.mxu3 %v1226_v6 }
  0x1b   : > { %v722_v50 = vadd.f32 %v1270_v46, %v721_v49 }
  0x1c   : > { %v615_v20 = vrot.slane %v614_v18, 1  ;;  %v622_v21 = vrot.slane %v621_v19, 1 }
  0x1d   : > { %v1456_v51 = vsel %vm723_vm3, %v1270_v46, %v722_v50 }
  0x1e   : > { %v616_v22 = vadd.f32 %v615_v20, %v614_v18  ;;  %v623_v23 = vadd.f32 %v622_v21, %v621_v19  ;;  %884 = vmatpush.bf16.msra.mxu3 %v1225_v10 }
  0x20   : > { %v624_v24 = vpack.c.bf16 %v616_v22, %v616_v22  ;;  %v625_v25 = vpack.c.bf16 %v623_v23, %v623_v23  ;;  %v1263_v23 = vld [vmem:[%s571_s13] ss:$0 sm:$0xff] }
  0x22   : > { %v632_v26 = vunpack.c.l.b16 %v624_v24  ;;  %v633_v27 = vunpack.c.l.b16 %v625_v25  ;;  %885 = vmatpush.bf16.msra.mxu3 %v1224_v13 }
  0x24   : > { %v635_v28 = vsel %vm634_vm2, %v633_v27, %v632_v26 }
  0x25   : > { %v636_v29 = vpack.c.b16 %v635_v28, %v635_v28  ;;  %v1264_v28 = vld [vmem:[%s574_s16] ss:$0 sm:$0xff]  ;;  %s964_s16 = sshll.u32 %s1336_s27, 4  ;;  %s965_s16 = int_to_ptr.vmem [resolvable:$true] %s964_s16 }
  0x27   : > { %1155 = vmatmul.msk.bf16.vlgmr.msra.gmra.mxu0 %vm609_vm0, %v636_v29 }
  0xa4   : > { %v661_v31 = vpop.f32.mrf.mxu0 }
  0xa5   : > { %v665_v32 = vpack.c.bf16 %v661_v31, %v661_v31 }
  0xa7   : > { %1164 = vmatmul.msk.bf16.vlgmr.msra.gmra.mxu1 %vm609_vm0, %v665_v32 }
  0xac   : > { %v663_v33 = vpop.f32.mrf.mxu0 }
  0xad   : > { %v1223_v33 = vld [vmem:[%s1483_s15 + $0x18] sm:$0xff] }
  0xae   : > { %886 = vmatpush.bf16.msra.mxu3 %v1223_v33 }
 0x124   : > { %v698_v35 = vpop.f32.mrf.mxu1 }
 0x125   : > { %v699_v36 = vadd.f32 %v1262_v34, %v698_v35  ;;  %v1222_v34 = vld [vmem:[%s1483_s15 + $0x10] sm:$0xff]  ;;  %v1221_v35 = vld [vmem:[%s1483_s15 + $0x8] sm:$0xff] }
 0x126   : > { %887 = vmatpush.bf16.msra.mxu3 %v1222_v34 }
 0x127   : > { %v703_v37 = vrot.slane %v699_v36, 1  ;;  %v704_v38 = vperm.slane %v699_v36, 0  ;;  %v1220_v36 = vld [vmem:[%s1483_s15] sm:$0xff] }
 0x129   : > { %v708_v39 = vadd.f32 %v704_v38, %v607_v7  ;;  %v705_v40 = vperm.slane %v703_v37, 0  ;;  %v1265_v38 = vld [vmem:[%s582_s19] ss:$0 sm:$0xff]  ;;  %s1337_s19 = smov 128  }
 0x12a   : > { %888 = vmatpush.bf16.msra.mxu3 %v1221_v35 }
 0x12b   : > { %v712_v41 = vsel %vm609_vm0, %v708_v39, 0.0  ;;  %v709_v43 = vadd.f32 %v705_v40, %v608_v8 }
 0x12c   : > { %v700_v42 = vpop.f32.mrf.mxu1  ;;  %713 = vadd.xlane.f32.xlu0 %v712_v41 }
 0x12d   : > { %v715_v44 = vsel %vm609_vm0, %v709_v43, 0.0 }
 0x12e   : > { %889 = vmatpush.bf16.msra.mxu3 %v1220_v36 }
 0x134   : > { %716 = vadd.xlane.f32.xlu0 %v715_v44 }
 0x19f   : > { %v714_v52 = vpop.xlane.xlu0 %713 }
 0x1a0   : > { %v725_v53 = vmul.f32 %v1456_v51, %v714_v52 }
 0x1a2   : > { %v727_v54 = vsub.f32 %v708_v39, %v725_v53 }
 0x1a4   : > { %v729_v55 = vmul.f32 %v727_v54, %v727_v54 }
 0x1a6   : > { %v731_v56 = vsel %vm609_vm0, %v729_v55, 0.0 }
 0x1a7   : > { %732 = vadd.xlane.f32.xlu1 %v731_v56  ;;  %v717_v57 = vpop.xlane.xlu0 %716 }
 0x1a8   : > { %v726_v58 = vmul.f32 %v1456_v51, %v717_v57 }
 0x1aa   : > { %v728_v59 = vsub.f32 %v709_v43, %v726_v58 }
 0x1ac   : > { %v730_v60 = vmul.f32 %v728_v59, %v728_v59 }
 0x1ae   : > { %v734_v61 = vsel %vm609_vm0, %v730_v60, 0.0 }
 0x1af   : > { %735 = vadd.xlane.f32.xlu1 %v734_v61 }
 0x21a   : > { %v733_v63 = vpop.xlane.xlu1 %732 }
 0x21b   : > { %v737_v1 = vmul.f32 %v733_v63, %v1456_v51 }
 0x21d   : > { %v739_v2 = vadd.f32 1e-05, %v737_v1 }
 0x21f   : > { %1271 = vrsqrt.f32 %v739_v2  ;;  %vm747_vm5 = vweird.f32 %v739_v2 }
 0x222   : > { %v736_v4 = vpop.xlane.xlu1 %735 }
 0x223   : > { %v738_v5 = vmul.f32 %v736_v4, %v1456_v51 }
 0x225   : > { %v1272_v7 = vpop.eup %1271  ;;  %v740_v8 = vadd.f32 1e-05, %v738_v5 }
 0x226   : > { %v742_v9 = vmul.f32 %v1272_v7, %v739_v2  ;;  %vm748_vm4 = vweird.f32 %v1272_v7 }
 0x227   : > { %1273 = vrsqrt.f32 %v740_v8  ;;  %vm749_vm6 = vmor %vm747_vm5, %vm748_vm4  ;;  %vm757_vm8 = vweird.f32 %v740_v8 }
 0x228   : > { %v743_v11 = vmul.f32 %v1272_v7, %v742_v9 }
 0x22a   : > { %v744_v12 = vmul.f32 0.5, %v743_v11 }
 0x22c   : > { %v745_v14 = vsub.f32 1.5, %v744_v12 }
 0x22d   : > { %v1274_v15 = vpop.eup %1273 }
 0x22e   : > { %v746_v16 = vmul.f32 %v1272_v7, %v745_v14  ;;  %v752_v17 = vmul.f32 %v1274_v15, %v740_v8  ;;  %vm758_vm7 = vweird.f32 %v1274_v15 }
 0x22f   : > { %vm759_vm9 = vmor %vm757_vm8, %vm758_vm7 }
 0x230   : > { %v753_v18 = vmul.f32 %v1274_v15, %v752_v17  ;;  %v750_v19 = vsel %vm749_vm6, %v1272_v7, %v746_v16  ;;  %v1268_v17 = vld [vmem:[%s596_s17] ss:$0 sm:$0xff] }
 0x231   : > { %v761_v22 = vmul.f32 %v750_v19, %v727_v54 }
 0x232   : > { %v754_v20 = vmul.f32 0.5, %v753_v18 }
 0x233   : > { %v766_v27 = vmul.f32 %v1263_v23, %v761_v22 }
 0x234   : > { %v755_v21 = vsub.f32 1.5, %v754_v20 }
 0x235   : > { %v771_v30 = vadd.f32 %v1264_v28, %v766_v27 }
 0x236   : > { %v756_v24 = vmul.f32 %v1274_v15, %v755_v21 }
 0x238   : > { %v760_v25 = vsel %vm759_vm9, %v1274_v15, %v756_v24  ;;  %v1267_v15 = vld [vmem:[%s593_s14] ss:$0 sm:$0xff]  ;;  %s1338_s14 = smov 8  }
 0x239   : > { %v762_v26 = vmul.f32 %v760_v25, %v728_v59 }
 0x23b   : > { %v767_v29 = vmul.f32 %v1263_v23, %v762_v26 }
 0x23d   : > { %v772_v31 = vadd.f32 %v1264_v28, %v767_v29 }
 0x23f   : > { %v773_v32 = vpack.c.bf16 %v772_v31, %v771_v30 }
 0x241   : > { %1173 = vmatmul.msk.bf16.vlgmr.msra.gmra.mxu2 %vm609_vm0, %v773_v32 }
 0x2c4   : > { %v806_v37 = vpop.f32.mrf.mxu2 }
 0x2c5   : > { %v807_v39 = vadd.f32 %v1265_v38, %v806_v37 }
 0x2c7   : > { %v811_v42 = vmax.f32 %v807_v39, 0.0 }
 0x2cc   : > { %v808_v40 = vpop.f32.mrf.mxu2 }
 0x2cd   : > { %v809_v41 = vadd.f32 %v1265_v38, %v808_v40 }
 0x2cf   : > { %v812_v43 = vmax.f32 %v809_v41, 0.0 }
 0x2d1   : > { %v813_v44 = vpack.c.bf16 %v812_v43, %v811_v42 }
 0x2d3   : > { %890 = vmatmul.bf16.vlgmr.msra.gmra.mxu3 %v813_v44 }
 0x356   : > { %v891_v46 = vpop.f32.mrf.mxu3 }
 0x357   : > { %v892_v47 = vadd.f32 %v1266_v45, %v891_v46 }
 0x359   : > { %v896_v48 = vadd.f32 %v892_v47, %v771_v30 }
 0x35b   : > { %v900_v49 = vsel %vm609_vm0, %v896_v48, 0.0 }
 0x35c   : > { %901 = vadd.xlane.f32.xlu2 %v900_v49 }
 0x35e   : > { %v893_v50 = vpop.f32.mrf.mxu3 }
 0x35f   : > { %v894_v52 = vadd.f32 %v1266_v45, %v893_v50 }
 0x361   : > { %v897_v53 = vadd.f32 %v894_v52, %v772_v31 }
 0x363   : > { %v903_v54 = vsel %vm609_vm0, %v897_v53, 0.0 }
 0x364   : > { %904 = vadd.xlane.f32.xlu2 %v903_v54 }
 0x3cf   : > { %v902_v55 = vpop.xlane.xlu2 %901 }
 0x3d0   : > { %v906_v56 = vmul.f32 %v902_v55, %v1456_v51 }
 0x3d2   : > { %v908_v57 = vsub.f32 %v896_v48, %v906_v56 }
 0x3d4   : > { %v910_v58 = vmul.f32 %v908_v57, %v908_v57 }
 0x3d6   : > { %v912_v59 = vsel %vm609_vm0, %v910_v58, 0.0 }
 0x3d7   : > { %913 = vadd.xlane.f32.xlu0 %v912_v59  ;;  %v905_v60 = vpop.xlane.xlu2 %904 }
 0x3d8   : > { %v907_v61 = vmul.f32 %v905_v60, %v1456_v51 }
 0x3da   : > { %v909_v62 = vsub.f32 %v897_v53, %v907_v61 }
 0x3dc   : > { %v911_v63 = vmul.f32 %v909_v62, %v909_v62 }
 0x3de   : > { %v915_v0 = vsel %vm609_vm0, %v911_v63, 0.0 }
 0x3df   : > { %916 = vadd.xlane.f32.xlu1 %v915_v0 }
 0x44a   : > { %v914_v1 = vpop.xlane.xlu0 %913 }
 0x44b   : > { %v918_v2 = vmul.f32 %v914_v1, %v1456_v51 }
 0x44d   : > { %v920_v3 = vadd.f32 1e-05, %v918_v2 }
 0x44f   : > { %1275 = vrsqrt.f32 %v920_v3  ;;  %vm928_vm11 = vweird.f32 %v920_v3 }
 0x452   : > { %v917_v4 = vpop.xlane.xlu1 %916 }
 0x453   : > { %v919_v5 = vmul.f32 %v917_v4, %v1456_v51 }
 0x455   : > { %v1276_v6 = vpop.eup %1275  ;;  %v921_v7 = vadd.f32 1e-05, %v919_v5 }
 0x456   : > { %v923_v8 = vmul.f32 %v1276_v6, %v920_v3  ;;  %vm929_vm10 = vweird.f32 %v1276_v6 }
 0x457   : > { %1277 = vrsqrt.f32 %v921_v7  ;;  %vm930_vm12 = vmor %vm928_vm11, %vm929_vm10  ;;  %vm938_vm14 = vweird.f32 %v921_v7 }
 0x458   : > { %v924_v9 = vmul.f32 %v1276_v6, %v923_v8 }
 0x45a   : > { %v925_v10 = vmul.f32 0.5, %v924_v9 }
 0x45c   : > { %v926_v11 = vsub.f32 1.5, %v925_v10 }
 0x45d   : > { %v1278_v12 = vpop.eup %1277 }
 0x45e   : > { %v927_v13 = vmul.f32 %v1276_v6, %v926_v11  ;;  %v933_v14 = vmul.f32 %v1278_v12, %v921_v7  ;;  %vm939_vm13 = vweird.f32 %v1278_v12 }
 0x45f   : > { %vm940_vm15 = vmor %vm938_vm14, %vm939_vm13 }
 0x460   : > { %v931_v51 = vsel %vm930_vm12, %v1276_v6, %v927_v13  ;;  %v934_v16 = vmul.f32 %v1278_v12, %v933_v14 }
 0x461   : > { %v942_v18 = vmul.f32 %v931_v51, %v908_v57 }
 0x462   : > { %v935_v19 = vmul.f32 0.5, %v934_v16 }
 0x463   : > { %v947_v20 = vmul.f32 %v1267_v15, %v942_v18 }
 0x464   : > { %v936_v21 = vsub.f32 1.5, %v935_v19 }
 0x465   : > { %v952_v22 = vadd.f32 %v1268_v17, %v947_v20 }
 0x466   : > { %v937_v23 = vmul.f32 %v1278_v12, %v936_v21 }
 0x467   : > { %954 = vst.msk [vmem:[#allocation2] sm:$0xff] %vm609_vm0, %v952_v22 }
 0x468   : > { %v941_v24 = vsel %vm940_vm15, %v1278_v12, %v937_v23 }
 0x469   : > { %v943_v25 = vmul.f32 %v941_v24, %v909_v62 }
 0x46b   : > { %v948_v26 = vmul.f32 %v1267_v15, %v943_v25 }
 0x46d   : > { %v953_v27 = vadd.f32 %v1268_v17, %v948_v26 }
 0x46f   : > { %955 = vst.msk [vmem:[#allocation2 + $0x8] sm:$0xff] %vm609_vm0, %v953_v27 }
 0x470   : > { %1229 = dma.vmem_to_hbm [thread:$0]  (%p1232_p6), %s965_s16, 256, %s967_s21, [#allocation3], %s1337_s19, %s1337_s19, %s1338_s14  }
 0x471   : > { %1320 = dma.done.wait (%p1232_p6), [#allocation3], 256  }
 0x472   : > { %1322 = vsyncadd (%p1232_p6), [#allocation3], 4294967040 }
 0x473 PF: > { %s23_s23 = sadd.s32 1, %s1333_s23   ;;  %s1569_s21 = smov %s1329_s22 }
 0x474   : > { %p20_p7 = scmp.ge.s32.totalorder %s23_s23, 4   ;;  %s1570_s22 = smov %s1572_s25 }
 0x476   :  { %22 = sbr.rel (!%p20_p7) target bundleno = 2 (0x2), region = 129 }
 0x47b   :  { %983 = vsyncpa [#allocation3], 1 }
 0x47c   :  { %985 = vsyncpa [#allocation3 + $0x1], 1 }

</bundles_post_ra>
